<compile_context>
chip_gen: v7x
topology: tpu7x:2x2x1
jax: 0.10.0
libtpu: 0.0.40
codegen_flags: <defaults>
</compile_context>

<pallas_src>
import functools

import jax
import jax.numpy as jnp
from jax import lax
from jax.experimental import pallas as pl
from jax.experimental.pallas import tpu as pltpu


def _round_up(x, m):
    return (x + m - 1) // m * m


def _merge_block_kernel(p_ref, w_ref, b_ref, g_ref, beta_ref, o_ref, *, eps):
    # p_ref:    (tm, 9*C_in)    im2col patches (compute dtype, e.g. bf16)
    # w_ref:    (9*C_in, C_out) conv weight as matmul operand (resident)
    # b_ref / g_ref / beta_ref: (1, C_out) f32 conv bias / LN gamma / LN beta
    # o_ref:    (tm, C_out)
    # Conv-as-matmul on the MXU, f32 accumulation.
    y = jnp.dot(p_ref[...], w_ref[...], preferred_element_type=jnp.float32)
    y = y + b_ref[...]
    # LayerNorm over the channel (last) dim, PyTorch semantics (biased variance, eps in sqrt).
    # One-pass moments: mean and E[y^2] are independent cross-lane (XLU) reductions.
    mean = jnp.mean(y, axis=-1, keepdims=True)
    mean_sq = jnp.mean(y * y, axis=-1, keepdims=True)
    var = mean_sq - mean * mean
    inv = lax.rsqrt(var + eps)  # EUP rsqrt -> off the VALU critical path
    o_ref[...] = ((y - mean) * (inv * g_ref[...]) + beta_ref[...]).astype(o_ref.dtype)


def merge_block_pallas(x, conv_w, conv_b, ln_gamma, ln_beta, *,
                       eps=1e-5, tm=512, compute_dtype=jnp.bfloat16, out_dtype=None):
    """CSWin Merge_Block forward.

    x:        (B, H, W, C_in)      channels-last ('b h w c') input
    conv_w:   (C_out, C_in, 3, 3)  PyTorch OIHW conv weight
    conv_b:   (C_out,)             conv bias
    ln_gamma: (C_out,)             LayerNorm weight
    ln_beta:  (C_out,)             LayerNorm bias
    returns   (B, ceil(H/2), ceil(W/2), C_out) in `out_dtype` (defaults to x.dtype)

    Note: matmul operands are quantized to `compute_dtype` (bf16 by default) with f32
    accumulation, so results differ from PyTorch's f32 conv at bf16 input precision.
    """
    B, H, W, C_in = x.shape
    C_out = conv_w.shape[0]
    H_out = (H - 1) // 2 + 1
    W_out = (W - 1) // 2 + 1
    K9 = 9 * C_in
    M = B * H_out * W_out
    out_dtype = x.dtype if out_dtype is None else jnp.dtype(out_dtype)

    # --- im2col in the compute dtype (cast BEFORE pad/slices: halves wrapper HBM bytes) ---
    # TODO(synk): fuse the im2col into the kernel (x_pad kept in HBM via memory_space=pl.ANY
    # + per-tap strided DMAs into VMEM, nine accumulated (tm, C_in)@(C_in, C_out) dots) to
    # drop the 2.25x patches round trip entirely; kept in XLA here for lowering robustness.
    x_c = x.astype(compute_dtype)
    x_pad = jnp.pad(x_c, ((0, 0), (1, 1), (1, 1), (0, 0)))
    cols = []
    for kh in range(3):
        for kw in range(3):
            cols.append(
                lax.slice(
                    x_pad,
                    (0, kh, kw, 0),
                    (B, kh + 2 * (H_out - 1) + 1, kw + 2 * (W_out - 1) + 1, C_in),
                    (1, 2, 2, 1),
                )
            )
    patches = jnp.concatenate(cols, axis=-1).reshape(M, K9)

    # Conv weight as a (9*C_in, C_out) matmul operand, (kh, kw, c_in) ordering to match patches.
    w_mat = jnp.transpose(conv_w, (2, 3, 1, 0)).reshape(K9, C_out).astype(compute_dtype)
    b_2d = conv_b.reshape(1, C_out).astype(jnp.float32)
    g_2d = ln_gamma.reshape(1, C_out).astype(jnp.float32)
    beta_2d = ln_beta.reshape(1, C_out).astype(jnp.float32)

    cdt_bytes = jnp.dtype(compute_dtype).itemsize
    out_bytes = jnp.dtype(out_dtype).itemsize

    # --- row tiling: no pad / slice copies; Pallas masks the ragged last block's store. ---
    # tm must be a multiple of the sublane packing (16 rows for bf16, 8 for f32).
    sub = max(32 // cdt_bytes, 32 // out_bytes, 8)
    tm = _round_up(max(int(tm), sub), sub)
    tm = min(tm, _round_up(M, sub))
    if pl.cdiv(M, tm) < 2 and M > 2 * sub:
        # Keep at least two grid steps so both v7x TensorCores get work ("parallel" axis).
        tm = _round_up(pl.cdiv(M, 2), sub)
    grid = (pl.cdiv(M, tm),)

    cost = pl.CostEstimate(
        flops=2 * M * K9 * C_out + 10 * M * C_out,
        transcendentals=M,  # one rsqrt per output row
        bytes_accessed=(M * K9 + K9 * C_out) * cdt_bytes
        + M * C_out * out_bytes
        + 3 * C_out * 4,
    )

    # Scoped-VMEM limit from the actual tile footprint (conservative: weight counted twice),
    # floored above the 16/32 MiB defaults and capped below v7x's 64 MiB physical VMEM.
    vmem_need = (
        2 * tm * K9 * cdt_bytes          # patches, double-buffered
        + 2 * tm * C_out * out_bytes     # output, double-buffered
        + 2 * K9 * C_out * cdt_bytes     # resident weight (conservative 2 buffers)
        + 6 * C_out * 4                  # bias / gamma / beta
        + 4 * tm * C_out * 4             # f32 LN intermediates headroom
    )
    vmem_limit = int(min(max(int(1.4 * vmem_need), 32 * 1024 * 1024), 56 * 1024 * 1024))

    def _call(weight_pipeline_mode):
        if weight_pipeline_mode is None:
            w_spec = pl.BlockSpec((K9, C_out), lambda i: (0, 0))
        else:
            # Constant index_map -> one DMA; a single VMEM buffer is enough and reclaims
            # up to a full weight's worth of VMEM (matters most on v7x, 64 MiB/TC).
            w_spec = pl.BlockSpec((K9, C_out), lambda i: (0, 0),
                                  pipeline_mode=weight_pipeline_mode)
        return pl.pallas_call(
            functools.partial(_merge_block_kernel, eps=eps),
            out_shape=jax.ShapeDtypeStruct((M, C_out), out_dtype),
            grid_spec=pltpu.PrefetchScalarGridSpec(
                num_scalar_prefetch=0,
                grid=grid,
                in_specs=[
                    pl.BlockSpec((tm, K9), lambda i: (i, 0)),     # patches tile (pipelined)
                    w_spec,                                       # conv weight (resident)
                    pl.BlockSpec((1, C_out), lambda i: (0, 0)),   # conv bias
                    pl.BlockSpec((1, C_out), lambda i: (0, 0)),   # LN gamma
                    pl.BlockSpec((1, C_out), lambda i: (0, 0)),   # LN beta
                ],
                out_specs=pl.BlockSpec((tm, C_out), lambda i: (i, 0)),
            ),
            compiler_params=pltpu.CompilerParams(
                dimension_semantics=("parallel",),
                vmem_limit_bytes=vmem_limit,
            ),
            cost_estimate=cost,
        )(patches, w_mat, b_2d, g_2d, beta_2d)

    try:
        out = _call(pl.Buffered(1))
    except Exception:  # fallback for jax builds without single-buffer pipeline_mode support
        out = _call(None)

    return out.reshape(B, H_out, W_out, C_out)


def merge_block_reference(x, conv_w, conv_b, ln_gamma, ln_beta, eps=1e-5):
    y = lax.conv_general_dilated(
        x.astype(jnp.float32),
        jnp.transpose(conv_w, (2, 3, 1, 0)).astype(jnp.float32),  # OIHW -> HWIO
        window_strides=(2, 2),
        padding=((1, 1), (1, 1)),
        dimension_numbers=("NHWC", "HWIO", "NHWC"),
    ) + conv_b
    mean = jnp.mean(y, axis=-1, keepdims=True)
    var = jnp.mean((y - mean) ** 2, axis=-1, keepdims=True)
    return (y - mean) / jnp.sqrt(var + eps) * ln_gamma + ln_beta


if __name__ == "__main__":
    # Small CSWin-like downsample: B=2, 16x16 tokens-as-image, dim=16 -> dim_out=32
    # (Note: real CSWin stages have C_out >= 128; do not benchmark/tune with this demo shape.)
    B, H, W, C_in, C_out = 2, 16, 16, 16, 32
    key = jax.random.PRNGKey(0)
    kx, kw, kb, kg, kbe = jax.random.split(key, 5)

    x = jax.random.normal(kx, (B, H, W, C_in), dtype=jnp.float32)
    conv_w = jax.random.normal(kw, (C_out, C_in, 3, 3), dtype=jnp.float32) * 0.05
    conv_b = jax.random.normal(kb, (C_out,), dtype=jnp.float32) * 0.05
    ln_gamma = 1.0 + 0.1 * jax.random.normal(kg, (C_out,), dtype=jnp.float32)
    ln_beta = 0.1 * jax.random.normal(kbe, (C_out,), dtype=jnp.float32)

    out = merge_block_pallas(x, conv_w, conv_b, ln_gamma, ln_beta)
    out = jax.block_until_ready(out)

    ref = merge_block_reference(x, conv_w, conv_b, ln_gamma, ln_beta)
    assert out.shape == (B, H // 2, W // 2, C_out)
    # bf16 matmul operands with f32 accumulation vs an all-f32 reference -> loosened tolerance.
    assert jnp.allclose(out, ref, atol=5e-2, rtol=5e-2), "mismatch vs reference"
    print("KERNEL_OK")
</pallas_src>

<mosaic_0001>
module attributes {stable_mosaic.version = 11 : i64} {
  func.func @_merge_block_kernel(%arg0: i32, %arg1: memref<64x144xbf16, #tpu.memory_space<vmem>>, %arg2: memref<144x32xbf16, #tpu.memory_space<vmem>>, %arg3: memref<1x32xf32, #tpu.memory_space<vmem>>, %arg4: memref<1x32xf32, #tpu.memory_space<vmem>>, %arg5: memref<1x32xf32, #tpu.memory_space<vmem>>, %arg6: memref<64x32xf32, #tpu.memory_space<vmem>>) attributes {dimension_semantics = [#tpu.dimension_semantics<parallel>], iteration_bounds = array<i64: 2>, scalar_prefetch = 0 : i64, scratch_operands = 0 : i64, tpu.core_type = #tpu.core_type<tc>, window_params = [{transform_indices = @transform_0, window_bounds = array<i64: 64, 144>}, {pipeline_mode = #tpu.pipeline_mode<synchronous>, transform_indices = @transform_1, window_bounds = array<i64: 144, 32>}, {pipeline_mode = #tpu.pipeline_mode<synchronous>, transform_indices = @transform_2, window_bounds = array<i64: 1, 32>}, {pipeline_mode = #tpu.pipeline_mode<synchronous>, transform_indices = @transform_3, window_bounds = array<i64: 1, 32>}, {pipeline_mode = #tpu.pipeline_mode<synchronous>, transform_indices = @transform_4, window_bounds = array<i64: 1, 32>}, {transform_indices = @transform_5, window_bounds = array<i64: 64, 32>}]} {
    %c0 = arith.constant 0 : index
    %c0_0 = arith.constant 0 : index
    %0 = vector.load %arg1[%c0, %c0_0] : memref<64x144xbf16, #tpu.memory_space<vmem>>, vector<64x144xbf16>
    %c0_1 = arith.constant 0 : index
    %c0_2 = arith.constant 0 : index
    %1 = vector.load %arg2[%c0_1, %c0_2] : memref<144x32xbf16, #tpu.memory_space<vmem>>, vector<144x32xbf16>
    %cst = arith.constant dense<0.000000e+00> : vector<64x32xf32>
    %2 = tpu.matmul %0, %1, %cst {dimension_numbers = #tpu.dot_dimension_numbers<[1], [0], [0], [1], [0, 0, 1, 1], [], []>} : vector<64x144xbf16>, vector<144x32xbf16>, vector<64x32xf32> -> vector<64x32xf32>
    %c0_3 = arith.constant 0 : index
    %c0_4 = arith.constant 0 : index
    %3 = vector.load %arg3[%c0_3, %c0_4] : memref<1x32xf32, #tpu.memory_space<vmem>>, vector<1x32xf32>
    %4 = vector.broadcast %3 : vector<1x32xf32> to vector<64x32xf32>
    %5 = arith.addf %2, %4 : vector<64x32xf32>
    %cst_5 = arith.constant dense<0.000000e+00> : vector<64xf32>
    %6 = vector.multi_reduction <add>, %5, %cst_5 [1] : vector<64x32xf32> to vector<64xf32>
    %7 = vector.shape_cast %6 : vector<64xf32> to vector<64x1xf32>
    %cst_6 = arith.constant 3.200000e+01 : f32
    %8 = vector.broadcast %cst_6 : f32 to vector<64x1xf32>
    %9 = arith.divf %7, %8 : vector<64x1xf32>
    %10 = arith.mulf %5, %5 : vector<64x32xf32>
    %cst_7 = arith.constant dense<0.000000e+00> : vector<64xf32>
    %11 = vector.multi_reduction <add>, %10, %cst_7 [1] : vector<64x32xf32> to vector<64xf32>
    %12 = vector.shape_cast %11 : vector<64xf32> to vector<64x1xf32>
    %cst_8 = arith.constant 3.200000e+01 : f32
    %13 = vector.broadcast %cst_8 : f32 to vector<64x1xf32>
    %14 = arith.divf %12, %13 : vector<64x1xf32>
    %15 = arith.mulf %9, %9 : vector<64x1xf32>
    %16 = arith.subf %14, %15 : vector<64x1xf32>
    %cst_9 = arith.constant 9.99999974E-6 : f32
    %17 = vector.broadcast %cst_9 : f32 to vector<64x1xf32>
    %18 = arith.addf %16, %17 : vector<64x1xf32>
    %19 = math.rsqrt %18 : vector<64x1xf32>
    %20 = vector.broadcast %9 : vector<64x1xf32> to vector<64x32xf32>
    %21 = arith.subf %5, %20 : vector<64x32xf32>
    %c0_10 = arith.constant 0 : index
    %c0_11 = arith.constant 0 : index
    %22 = vector.load %arg4[%c0_10, %c0_11] : memref<1x32xf32, #tpu.memory_space<vmem>>, vector<1x32xf32>
    %23 = vector.broadcast %19 : vector<64x1xf32> to vector<64x32xf32>
    %24 = vector.broadcast %22 : vector<1x32xf32> to vector<64x32xf32>
    %25 = arith.mulf %23, %24 : vector<64x32xf32>
    %26 = arith.mulf %21, %25 : vector<64x32xf32>
    %c0_12 = arith.constant 0 : index
    %c0_13 = arith.constant 0 : index
    %27 = vector.load %arg5[%c0_12, %c0_13] : memref<1x32xf32, #tpu.memory_space<vmem>>, vector<1x32xf32>
    %28 = vector.broadcast %27 : vector<1x32xf32> to vector<64x32xf32>
    %29 = arith.addf %26, %28 : vector<64x32xf32>
    %c0_14 = arith.constant 0 : index
    %c0_15 = arith.constant 0 : index
    %30 = vector.load %arg6[%c0_14, %c0_15] : memref<64x32xf32, #tpu.memory_space<vmem>>, vector<64x32xf32>
    tpu.vector_store %arg6[%c0_14, %c0_15], %29 {strides = array<i32>} : memref<64x32xf32, #tpu.memory_space<vmem>>, vector<64x32xf32>,
    return
  }
  func.func @transform_0(%arg0: i32) -> (i32, i32) {
    %c0_i32 = arith.constant 0 : i32
    %c0_i32_0 = arith.constant 0 : i32
    return %arg0, %c0_i32 : i32, i32
  }
  func.func @transform_1(%arg0: i32) -> (i32, i32) {
    %c0_i32 = arith.constant 0 : i32
    %c0_i32_0 = arith.constant 0 : i32
    %c0_i32_1 = arith.constant 0 : i32
    return %c0_i32, %c0_i32_0 : i32, i32
  }
  func.func @transform_2(%arg0: i32) -> (i32, i32) {
    %c0_i32 = arith.constant 0 : i32
    %c0_i32_0 = arith.constant 0 : i32
    %c0_i32_1 = arith.constant 0 : i32
    return %c0_i32, %c0_i32_0 : i32, i32
  }
  func.func @transform_3(%arg0: i32) -> (i32, i32) {
    %c0_i32 = arith.constant 0 : i32
    %c0_i32_0 = arith.constant 0 : i32
    %c0_i32_1 = arith.constant 0 : i32
    return %c0_i32, %c0_i32_0 : i32, i32
  }
  func.func @transform_4(%arg0: i32) -> (i32, i32) {
    %c0_i32 = arith.constant 0 : i32
    %c0_i32_0 = arith.constant 0 : i32
    %c0_i32_1 = arith.constant 0 : i32
    return %c0_i32, %c0_i32_0 : i32, i32
  }
  func.func @transform_5(%arg0: i32) -> (i32, i32) {
    %c0_i32 = arith.constant 0 : i32
    %c0_i32_0 = arith.constant 0 : i32
    return %arg0, %c0_i32 : i32, i32
  }
}

module attributes {stable_mosaic.version = 11 : i64} {
  func.func @_merge_block_kernel(%arg0: i32, %arg1: memref<64x144xbf16, #tpu.memory_space<vmem>>, %arg2: memref<144x32xbf16, #tpu.memory_space<vmem>>, %arg3: memref<1x32xf32, #tpu.memory_space<vmem>>, %arg4: memref<1x32xf32, #tpu.memory_space<vmem>>, %arg5: memref<1x32xf32, #tpu.memory_space<vmem>>, %arg6: memref<64x32xf32, #tpu.memory_space<vmem>>) attributes {dimension_semantics = [#tpu.dimension_semantics<parallel>], iteration_bounds = array<i64: 2>, scalar_prefetch = 0 : i64, scratch_operands = 0 : i64, tpu.core_type = #tpu.core_type<tc>, window_params = [{transform_indices = @transform_0, window_bounds = array<i64: 64, 144>}, {pipeline_mode = #tpu.pipeline_mode<synchronous>, transform_indices = @transform_1, window_bounds = array<i64: 144, 32>}, {pipeline_mode = #tpu.pipeline_mode<synchronous>, transform_indices = @transform_2, window_bounds = array<i64: 1, 32>}, {pipeline_mode = #tpu.pipeline_mode<synchronous>, transform_indices = @transform_3, window_bounds = array<i64: 1, 32>}, {pipeline_mode = #tpu.pipeline_mode<synchronous>, transform_indices = @transform_4, window_bounds = array<i64: 1, 32>}, {transform_indices = @transform_5, window_bounds = array<i64: 64, 32>}]} {
    %c0 = arith.constant 0 : index
    %c0_0 = arith.constant 0 : index
    %0 = vector.load %arg1[%c0, %c0_0] : memref<64x144xbf16, #tpu.memory_space<vmem>>, vector<64x144xbf16>
    %c0_1 = arith.constant 0 : index
    %c0_2 = arith.constant 0 : index
    %1 = vector.load %arg2[%c0_1, %c0_2] : memref<144x32xbf16, #tpu.memory_space<vmem>>, vector<144x32xbf16>
    %cst = arith.constant dense<0.000000e+00> : vector<64x32xf32>
    %2 = tpu.matmul %0, %1, %cst {dimension_numbers = #tpu.dot_dimension_numbers<[1], [0], [0], [1], [0, 0, 1, 1], [], []>} : vector<64x144xbf16>, vector<144x32xbf16>, vector<64x32xf32> -> vector<64x32xf32>
    %c0_3 = arith.constant 0 : index
    %c0_4 = arith.constant 0 : index
    %3 = vector.load %arg3[%c0_3, %c0_4] : memref<1x32xf32, #tpu.memory_space<vmem>>, vector<1x32xf32>
    %4 = vector.broadcast %3 : vector<1x32xf32> to vector<64x32xf32>
    %5 = arith.addf %2, %4 : vector<64x32xf32>
    %cst_5 = arith.constant dense<0.000000e+00> : vector<64xf32>
    %6 = vector.multi_reduction <add>, %5, %cst_5 [1] : vector<64x32xf32> to vector<64xf32>
    %7 = vector.shape_cast %6 : vector<64xf32> to vector<64x1xf32>
    %cst_6 = arith.constant 3.200000e+01 : f32
    %8 = vector.broadcast %cst_6 : f32 to vector<64x1xf32>
    %9 = arith.divf %7, %8 : vector<64x1xf32>
    %10 = arith.mulf %5, %5 : vector<64x32xf32>
    %cst_7 = arith.constant dense<0.000000e+00> : vector<64xf32>
    %11 = vector.multi_reduction <add>, %10, %cst_7 [1] : vector<64x32xf32> to vector<64xf32>
    %12 = vector.shape_cast %11 : vector<64xf32> to vector<64x1xf32>
    %cst_8 = arith.constant 3.200000e+01 : f32
    %13 = vector.broadcast %cst_8 : f32 to vector<64x1xf32>
    %14 = arith.divf %12, %13 : vector<64x1xf32>
    %15 = arith.mulf %9, %9 : vector<64x1xf32>
    %16 = arith.subf %14, %15 : vector<64x1xf32>
    %cst_9 = arith.constant 9.99999974E-6 : f32
    %17 = vector.broadcast %cst_9 : f32 to vector<64x1xf32>
    %18 = arith.addf %16, %17 : vector<64x1xf32>
    %19 = math.rsqrt %18 : vector<64x1xf32>
    %20 = vector.broadcast %9 : vector<64x1xf32> to vector<64x32xf32>
    %21 = arith.subf %5, %20 : vector<64x32xf32>
    %c0_10 = arith.constant 0 : index
    %c0_11 = arith.constant 0 : index
    %22 = vector.load %arg4[%c0_10, %c0_11] : memref<1x32xf32, #tpu.memory_space<vmem>>, vector<1x32xf32>
    %23 = vector.broadcast %19 : vector<64x1xf32> to vector<64x32xf32>
    %24 = vector.broadcast %22 : vector<1x32xf32> to vector<64x32xf32>
    %25 = arith.mulf %23, %24 : vector<64x32xf32>
    %26 = arith.mulf %21, %25 : vector<64x32xf32>
    %c0_12 = arith.constant 0 : index
    %c0_13 = arith.constant 0 : index
    %27 = vector.load %arg5[%c0_12, %c0_13] : memref<1x32xf32, #tpu.memory_space<vmem>>, vector<1x32xf32>
    %28 = vector.broadcast %27 : vector<1x32xf32> to vector<64x32xf32>
    %29 = arith.addf %26, %28 : vector<64x32xf32>
    %c0_14 = arith.constant 0 : index
    %c0_15 = arith.constant 0 : index
    %30 = vector.load %arg6[%c0_14, %c0_15] : memref<64x32xf32, #tpu.memory_space<vmem>>, vector<64x32xf32>
    tpu.vector_store %arg6[%c0_14, %c0_15], %29 {strides = array<i32>} : memref<64x32xf32, #tpu.memory_space<vmem>>, vector<64x32xf32>,
    return
  }
  func.func @transform_0(%arg0: i32) -> (i32, i32) {
    %c0_i32 = arith.constant 0 : i32
    %c0_i32_0 = arith.constant 0 : i32
    return %arg0, %c0_i32 : i32, i32
  }
  func.func @transform_1(%arg0: i32) -> (i32, i32) {
    %c0_i32 = arith.constant 0 : i32
    %c0_i32_0 = arith.constant 0 : i32
    %c0_i32_1 = arith.constant 0 : i32
    return %c0_i32, %c0_i32_0 : i32, i32
  }
  func.func @transform_2(%arg0: i32) -> (i32, i32) {
    %c0_i32 = arith.constant 0 : i32
    %c0_i32_0 = arith.constant 0 : i32
    %c0_i32_1 = arith.constant 0 : i32
    return %c0_i32, %c0_i32_0 : i32, i32
  }
  func.func @transform_3(%arg0: i32) -> (i32, i32) {
    %c0_i32 = arith.constant 0 : i32
    %c0_i32_0 = arith.constant 0 : i32
    %c0_i32_1 = arith.constant 0 : i32
    return %c0_i32, %c0_i32_0 : i32, i32
  }
  func.func @transform_4(%arg0: i32) -> (i32, i32) {
    %c0_i32 = arith.constant 0 : i32
    %c0_i32_0 = arith.constant 0 : i32
    %c0_i32_1 = arith.constant 0 : i32
    return %c0_i32, %c0_i32_0 : i32, i32
  }
  func.func @transform_5(%arg0: i32) -> (i32, i32) {
    %c0_i32 = arith.constant 0 : i32
    %c0_i32_0 = arith.constant 0 : i32
    return %arg0, %c0_i32 : i32, i32
  }
}

</mosaic_0001>

<bundles_post_ra>
// kernel: tpu_custom_call.1
= control target key start
LH: loop header
LB: loop body
LE: loop exit
PB: predicated region body
PF: predicated region fallthrough
CT: control target
= control target key end

     0   :  { %s789_s18 = smov 0   ;;  %s985_s0 = inlined_call_operand.vmem [shape: bf16[128,144], index: 0, kind: input, shape index: {}]   ;;  %s986_s1 = inlined_call_operand.vmem [shape: bf16[144,32], index: 1, kind: input, shape index: {}]   ;;  %s987_s2 = inlined_call_operand.vmem [shape: f32[1,32], index: 2, kind: input, shape index: {}]   ;;  %s988_s3 = inlined_call_operand.vmem [shape: f32[1,32], index: 3, kind: input, shape index: {}]   ;;  %s989_s4 = inlined_call_operand.vmem [shape: f32[1,32], index: 4, kind: input, shape index: {}]   ;;  %s990_s5 = inlined_call_operand.vmem [shape: f32[128,32], index: 5, kind: output, shape index: {}]  }
   0x1 LB: > { %s649_s19 = sadd.s32 4294967295, %s756_s18   ;;  %p653_p0 = scmp.ge.s32.totalorder %s756_s18, 1  ;;  %s756_s18 = sphi %s789_s18, %s15_s18  }
   0x2   : > { %p189_p1 = scmp.lt.s32.totalorder %s756_s18, 3 }
   0x4   : > { %p190_p2 = pnand %p653_p0, %p189_p1 }
   0x5   : > { %v713_v0 = vld [vmem:[%s986_s1] sm:$0xff] (!%p190_p2)   ;;  %v758_v1 = vmov (!%p190_p2), 0   ;;  %s654_s22 = sshll.u32 (!%p190_p2), %s649_s19, 3  ;;  %v714_v2 = vld [vmem:[%s986_s1 + $0x8] sm:$0xff] (!%p190_p2)   ;;  %v715_v3 = vld [vmem:[%s986_s1 + $0x10] sm:$0xff] (!%p190_p2)   ;;  %vm355_vm0 = vcmask (!%p190_p2), 130048  }
   0x6   : > { %193 = sbr.rel (%p190_p2) target bundleno = 454 (0x1c6), region = 40  ;;  %368 = vmatprep.subr.bf16.mxu0 (!%p190_p2), %v758_v1  ;;  %686 = vmatprep.subr.bf16.mxu1 (!%p190_p2), %v758_v1  ;;  %p219_p3 = scmp.lt.s32.totalorder (!%p190_p2), %s654_s22, 15  ;;  %v716_v4 = vld [vmem:[%s986_s1 + $0x18] sm:$0xff] (!%p190_p2)   ;;  %v717_v7 = vld [vmem:[%s986_s1 + $0x20] sm:$0xff] (!%p190_p2)   ;;  %v718_v8 = vld [vmem:[%s986_s1 + $0x28] sm:$0xff] (!%p190_p2)   ;;  %vm433_vm1 = vcmask (!%p190_p2), 261120  }
   0x7   : > { %369 = vmatpush1.bf16.msra.mxu0 (!%p190_p2), %v713_v0  ;;  %695 = vmatpush1.bf16.msra.mxu1 (!%p190_p2), %v713_v0  ;;  %v719_v9 = vld [vmem:[%s986_s1 + $0x30] sm:$0xff] (!%p190_p2)   ;;  %v720_v10 = vld [vmem:[%s986_s1 + $0x38] sm:$0xff] (!%p190_p2)   ;;  %v721_v11 = vld [vmem:[%s986_s1 + $0x40] sm:$0xff] (!%p190_p2)  }
   0x8   : > { %370 = vmatprep.subr.bf16.mxu0 (!%p190_p2), %v758_v1  ;;  %687 = vmatprep.subr.bf16.mxu1 (!%p190_p2), %v758_v1  ;;  %v659_v18 = vld [vmem:[%s987_s2] ss:$0 sm:$0xff] (!%p190_p2) }
   0xb   : > { %371 = vmatpush1.bf16.msra.mxu0 (!%p190_p2), %v714_v2  ;;  %696 = vmatpush1.bf16.msra.mxu1 (!%p190_p2), %v714_v2 }
   0xc   : > { %372 = vmatprep.subr.bf16.mxu0 (!%p190_p2), %v758_v1  ;;  %688 = vmatprep.subr.bf16.mxu1 (!%p190_p2), %v758_v1 }
   0xd   : > { %s992_s22 = smov (!%p219_p3, %s654_s22), 15 }
   0xe   : > { %s685_s27 = sshll.u32 %s992_s22, 3 }
   0xf   : > { %s814_s30 = scalar_lea.vmem %s985_s0, %s685_s27  ;;  %373 = vmatpush1.bf16.msra.mxu0 %v715_v3  ;;  %697 = vmatpush1.bf16.msra.mxu1 %v715_v3  ;;  %s950_s29 = scalar_lea.vmem %s990_s5, %s685_s27 }
  0x10   : > { %v724_v5 = vld [vmem:[%s814_s30 + $0x4] ss:$8 sps:$4 sm:$0xff]   ;;  %374 = vmatprep.subr.bf16.mxu0 %v758_v1  ;;  %689 = vmatprep.subr.bf16.mxu1 %v758_v1  ;;  %v722_v12 = vld [vmem:[%s814_s30] ss:$8 sps:$4 sm:$0xff]   ;;  %v728_v14 = vld [vmem:[%s814_s30 + $0x14] ss:$8 sps:$4 sm:$0xff]  }
  0x11   : > { %v727_v6 = vld [vmem:[%s814_s30 + $0x24] ss:$8 sps:$4 sm:$0xff]   ;;  %677 = vmatprep.mubr.msk.bf16.mxu0 %vm355_vm0, %v724_v5  ;;  %v725_v13 = vld [vmem:[%s814_s30 + $0x20] ss:$8 sps:$4 sm:$0xff]   ;;  %v731_v15 = vld [vmem:[%s814_s30 + $0x34] ss:$8 sps:$4 sm:$0xff]  }
  0x12   : > { %679 = vmatprep.mubr.msk.bf16.mxu1 %vm355_vm0, %v727_v6  ;;  %v730_v16 = vld [vmem:[%s814_s30 + $0x10] ss:$8 sps:$4 sm:$0xff]  }
  0x13   : > { %375 = vmatpush1.bf16.msra.mxu0 %v716_v4  ;;  %698 = vmatpush1.bf16.msra.mxu1 %v716_v4  ;;  %v733_v17 = vld [vmem:[%s814_s30 + $0x30] ss:$8 sps:$4 sm:$0xff]  }
  0x14   : > { %376 = vmatprep.subr.bf16.mxu0 %v758_v1  ;;  %690 = vmatprep.subr.bf16.mxu1 %v758_v1 }
  0x17   : > { %377 = vmatpush1.bf16.msra.mxu0 %v717_v7  ;;  %699 = vmatpush1.bf16.msra.mxu1 %v717_v7 }
  0x18   : > { %378 = vmatprep.subr.bf16.mxu0 %v758_v1  ;;  %691 = vmatprep.subr.bf16.mxu1 %v758_v1 }
  0x1b   : > { %379 = vmatpush1.bf16.msra.mxu0 %v718_v8  ;;  %700 = vmatpush1.bf16.msra.mxu1 %v718_v8 }
  0x1c   : > { %380 = vmatprep.subr.bf16.mxu0 %v758_v1  ;;  %692 = vmatprep.subr.bf16.mxu1 %v758_v1 }
  0x1f   : > { %381 = vmatpush1.bf16.msra.mxu0 %v719_v9  ;;  %701 = vmatpush1.bf16.msra.mxu1 %v719_v9 }
  0x20   : > { %382 = vmatprep.subr.bf16.mxu0 %v758_v1  ;;  %693 = vmatprep.subr.bf16.mxu1 %v758_v1 }
  0x23   : > { %383 = vmatpush1.bf16.msra.mxu0 %v720_v10  ;;  %702 = vmatpush1.bf16.msra.mxu1 %v720_v10 }
  0x24   : > { %384 = vmatprep.subr.bf16.mxu0 %v758_v1  ;;  %694 = vmatprep.subr.bf16.mxu1 %v758_v1 }
  0x27   : > { %385 = vmatpush1.bf16.msra.mxu0 %v721_v11  ;;  %703 = vmatpush1.bf16.msra.mxu1 %v721_v11 }
  0x2a   : > { %401 = vmatmul.mubr.bf16.vlgmr.msra.gmra.mrb[0].mxu0 %v722_v12  ;;  %417 = vmatmul.mubr.bf16.vlgmr.msra.gmra.mrb[0].mxu1 %v725_v13 }
  0x2b   : > { %678 = vmatprep.mubr.msk.bf16.mxu0 %vm355_vm0, %v728_v14  ;;  %680 = vmatprep.mubr.msk.bf16.mxu1 %vm355_vm0, %v731_v15 }
  0x32   : > { %409 = vmatmul.mubr.bf16.gmra.mrb[4].mxu0 %v730_v16  ;;  %425 = vmatmul.mubr.bf16.gmra.mrb[4].mxu1 %v733_v17 }
  0xfd   : > { %v402_v19 = vpop.f32.mrb[0].mxu0  ;;  %v418_v20 = vpop.f32.mrb[0].mxu1 }
  0xfe   : > { %v849_v21 = vadd.f32 %v659_v18, %v402_v19  ;;  %v404_v22 = vpop.f32.mrb[1].mxu0  ;;  %v420_v23 = vpop.f32.mrb[1].mxu1  ;;  %v851_v26 = vadd.f32 %v659_v18, %v418_v20 }
  0xff   : > { %v405_v24 = vpop.f32.mrb[2].mxu0  ;;  %v421_v25 = vpop.f32.mrb[2].mxu1 }
 0x100   : > { %v853_v27 = vadd.f32 %v659_v18, %v405_v24  ;;  %v855_v28 = vadd.f32 %v659_v18, %v421_v25  ;;  %v407_v29 = vpop.f32.mrb[3].mxu0  ;;  %v423_v30 = vpop.f32.mrb[3].mxu1  ;;  %v434_v31 = vsel %vm433_vm1, %v849_v21, 0.0  ;;  %v446_v34 = vsel %vm433_vm1, %v851_v26, 0.0 }
 0x101   : > { %435 = vadd.xlane.f32.xlu0 %v434_v31  ;;  %v467_v46 = vmul.f32 %v849_v21, %v849_v21  ;;  %v471_v51 = vmul.f32 %v851_v26, %v851_v26 }
 0x102   : > { %v449_v32 = vsel %vm433_vm1, %v855_v28, 0.0  ;;  %v468_v33 = vmul.f32 %v853_v27, %v853_v27  ;;  %v472_v39 = vmul.f32 %v855_v28, %v855_v28  ;;  %v437_v44 = vsel %vm433_vm1, %v853_v27, 0.0 }
 0x103   : > { %450 = vadd.xlane.f32.xlu1 %v449_v32  ;;  %v475_v49 = vsel %vm433_vm1, %v467_v46, 0.0  ;;  %v487_v54 = vsel %vm433_vm1, %v471_v51, 0.0 }
 0x104   : > { %v478_v37 = vsel %vm433_vm1, %v468_v33, 0.0  ;;  %v490_v48 = vsel %vm433_vm1, %v472_v39, 0.0 }
 0x105   : > { %447 = vadd.xlane.f32.xlu0 %v446_v34  ;;  %v410_v35 = vpop.f32.mrb[4].mxu0  ;;  %v426_v36 = vpop.f32.mrb[4].mxu1 }
 0x106   : > { %v412_v38 = vpop.f32.mrb[5].mxu0  ;;  %v428_v40 = vpop.f32.mrb[5].mxu1  ;;  %v868_v43 = vadd.f32 %v659_v18, %v410_v35  ;;  %v882_v53 = vadd.f32 %v659_v18, %v426_v36 }
 0x107   : > { %479 = vadd.xlane.f32.xlu1 %v478_v37  ;;  %v413_v41 = vpop.f32.mrb[6].mxu0  ;;  %v429_v42 = vpop.f32.mrb[6].mxu1 }
 0x108   : > { %v415_v45 = vpop.f32.mrb[7].mxu0  ;;  %v431_v47 = vpop.f32.mrb[7].mxu1  ;;  %v440_v50 = vsel %vm433_vm1, %v868_v43, 0.0  ;;  %v880_v52 = vadd.f32 %v659_v18, %v413_v41  ;;  %v885_v55 = vadd.f32 %v659_v18, %v429_v42  ;;  %v452_v57 = vsel %vm433_vm1, %v882_v53, 0.0 }
 0x109   : > { %438 = vadd.xlane.f32.xlu0 %v437_v44  ;;  %v469_v58 = vmul.f32 %v868_v43, %v868_v43  ;;  %v473_v62 = vmul.f32 %v882_v53, %v882_v53  ;;  %v926_v44 = vld [vmem:[%s988_s3] ss:$0 sm:$0xff] }
 0x10a   : > { %v443_v56 = vsel %vm433_vm1, %v880_v52, 0.0  ;;  %v455_v59 = vsel %vm433_vm1, %v885_v55, 0.0  ;;  %v470_v60 = vmul.f32 %v880_v52, %v880_v52  ;;  %v474_v0 = vmul.f32 %v885_v55, %v885_v55 }
 0x10b   : > { %491 = vadd.xlane.f32.xlu1 %v490_v48  ;;  %v481_v61 = vsel %vm433_vm1, %v469_v58, 0.0  ;;  %v493_v1 = vsel %vm433_vm1, %v473_v62, 0.0 }
 0x10c   : > { %v484_v63 = vsel %vm433_vm1, %v470_v60, 0.0  ;;  %v496_v2 = vsel %vm433_vm1, %v474_v0, 0.0 }
 0x10d   : > { %476 = vadd.xlane.f32.xlu0 %v475_v49 }
 0x10f   : > { %441 = vadd.xlane.f32.xlu1 %v440_v50 }
 0x111   : > { %488 = vadd.xlane.f32.xlu0 %v487_v54 }
 0x113   : > { %444 = vadd.xlane.f32.xlu1 %v443_v56 }
 0x115   : > { %453 = vadd.xlane.f32.xlu0 %v452_v57 }
 0x117   : > { %456 = vadd.xlane.f32.xlu1 %v455_v59 }
 0x119   : > { %482 = vadd.xlane.f32.xlu0 %v481_v61 }
 0x11b   : > { %485 = vadd.xlane.f32.xlu1 %v484_v63 }
 0x11d   : > { %494 = vadd.xlane.f32.xlu0 %v493_v1 }
 0x11f   : > { %497 = vadd.xlane.f32.xlu1 %v496_v2 }
 0x18e   : > { %v436_v3 = vpop.xlane.xlu0 %435 }
 0x18f   : > { %v907_v10 = vmul.f32 0.03125, %v436_v3 }
 0x190   : > { %v451_v4 = vpop.xlane.xlu1 %450 }
 0x191   : > { %v905_v7 = vmul.f32 0.03125, %v451_v4  ;;  %v507_v17 = vmul.f32 %v907_v10, %v907_v10 }
 0x192   : > { %v448_v5 = vpop.xlane.xlu0 %447 }
 0x193   : > { %v512_v12 = vmul.f32 %v905_v7, %v905_v7  ;;  %v913_v22 = vmul.f32 0.03125, %v448_v5  ;;  %v544_v49 = vsub.f32 %v855_v28, %v905_v7  ;;  %v682_v28 = vld [vmem:[%s989_s4] ss:$0 sm:$0xff] }
 0x194   : > { %v480_v6 = vpop.xlane.xlu1 %479 }
 0x195   : > { %v500_v13 = vmul.f32 0.03125, %v480_v6  ;;  %v511_v32 = vmul.f32 %v913_v22, %v913_v22 }
 0x196   : > { %v439_v8 = vpop.xlane.xlu0 %438 }
 0x197   : > { %v460_v9 = vmul.f32 0.03125, %v439_v8 }
 0x198   : > { %v492_v11 = vpop.xlane.xlu1 %491 }
 0x199   : > { %v508_v14 = vmul.f32 %v460_v9, %v460_v9  ;;  %v504_v15 = vmul.f32 0.03125, %v492_v11  ;;  %v540_v57 = vsub.f32 %v853_v27, %v460_v9  ;;  %v539_v27 = vsub.f32 %v849_v21, %v907_v10 }
 0x19a   : > { %v477_v16 = vpop.xlane.xlu0 %476 }
 0x19b   : > { %v516_v18 = vsub.f32 %v500_v13, %v508_v14  ;;  %v520_v19 = vsub.f32 %v504_v15, %v512_v12  ;;  %v499_v20 = vmul.f32 0.03125, %v477_v16 }
 0x19c   : > { %v442_v23 = vpop.xlane.xlu1 %441 }
 0x19d   : > { %v524_v24 = vadd.f32 1e-05, %v516_v18  ;;  %v528_v25 = vadd.f32 1e-05, %v520_v19  ;;  %v515_v29 = vsub.f32 %v499_v20, %v507_v17  ;;  %v917_v37 = vmul.f32 0.03125, %v442_v23 }
 0x19e   : > { %v489_v30 = vpop.xlane.xlu0 %488  ;;  %v543_v17 = vsub.f32 %v851_v26, %v913_v22 }
 0x19f   : > { %734 = vrsqrt.f32 %v524_v24  ;;  %v523_v31 = vadd.f32 1e-05, %v515_v29  ;;  %v503_v33 = vmul.f32 0.03125, %v489_v30  ;;  %v509_v45 = vmul.f32 %v917_v37, %v917_v37 }
 0x1a0   : > { %736 = vrsqrt.f32 %v528_v25  ;;  %v445_v34 = vpop.xlane.xlu1 %444  ;;  %v541_v25 = vsub.f32 %v868_v43, %v917_v37 }
 0x1a1   : > { %738 = vrsqrt.f32 %v523_v31  ;;  %v519_v35 = vsub.f32 %v503_v33, %v511_v32  ;;  %v919_v40 = vmul.f32 0.03125, %v445_v34 }
 0x1a2   : > { %v454_v36 = vpop.xlane.xlu0 %453 }
 0x1a3   : > { %v527_v38 = vadd.f32 1e-05, %v519_v35  ;;  %v921_v41 = vmul.f32 0.03125, %v454_v36  ;;  %v510_v50 = vmul.f32 %v919_v40, %v919_v40  ;;  %v542_v29 = vsub.f32 %v880_v52, %v919_v40 }
 0x1a4   : > { %v457_v39 = vpop.xlane.xlu1 %456 }
 0x1a5   : > { %740 = vrsqrt.f32 %v527_v38  ;;  %v513_v59 = vmul.f32 %v921_v41, %v921_v41  ;;  %v466_v60 = vmul.f32 0.03125, %v457_v39  ;;  %v545_v33 = vsub.f32 %v882_v53, %v921_v41 }
 0x1a6   : > { %v483_v42 = vpop.xlane.xlu0 %482 }
 0x1a7   : > { %v501_v46 = vmul.f32 0.03125, %v483_v42  ;;  %v514_v21 = vmul.f32 %v466_v60, %v466_v60  ;;  %v546_v52 = vsub.f32 %v885_v55, %v466_v60 }
 0x1a8   : > { %v486_v47 = vpop.xlane.xlu1 %485 }
 0x1a9   : > { %v735_v48 = vpop.eup %734  ;;  %v517_v51 = vsub.f32 %v501_v46, %v509_v45  ;;  %v502_v54 = vmul.f32 0.03125, %v486_v47 }
 0x1aa   : > { %v737_v56 = vpop.eup %736  ;;  %v555_v58 = vmul.f32 %v735_v48, %v926_v44  ;;  %v495_v61 = vpop.xlane.xlu0 %494 }
 0x1ab   : > { %v739_v62 = vpop.eup %738  ;;  %v559_v63 = vmul.f32 %v737_v56, %v926_v44  ;;  %v525_v0 = vadd.f32 1e-05, %v517_v51  ;;  %v518_v1 = vsub.f32 %v502_v54, %v510_v50  ;;  %v505_v2 = vmul.f32 0.03125, %v495_v61 }
 0x1ac   : > { %v563_v3 = vmul.f32 %v555_v58, %v540_v57  ;;  %v554_v4 = vmul.f32 %v739_v62, %v926_v44  ;;  %v498_v5 = vpop.xlane.xlu1 %497 }
 0x1ad   : > { %v567_v6 = vmul.f32 %v559_v63, %v544_v49  ;;  %742 = vrsqrt.f32 %v525_v0  ;;  %v526_v7 = vadd.f32 1e-05, %v518_v1  ;;  %v521_v8 = vsub.f32 %v505_v2, %v513_v59 }
 0x1ae   : > { %v578_v9 = vadd.f32 %v682_v28, %v563_v3  ;;  %v562_v11 = vmul.f32 %v554_v4, %v539_v27  ;;  %v506_v10 = vmul.f32 0.03125, %v498_v5 }
 0x1af   : > { %v582_v12 = vadd.f32 %v682_v28, %v567_v6  ;;  %744 = vrsqrt.f32 %v526_v7  ;;  %v529_v13 = vadd.f32 1e-05, %v521_v8  ;;  %v741_v14 = vpop.eup %740 }
 0x1b0   : > { %586 = vst.msk [vmem:[%s950_s29 + $0x8] sm:$0xff] %vm433_vm1, %v578_v9  ;;  %v577_v15 = vadd.f32 %v682_v28, %v562_v11  ;;  %v522_v16 = vsub.f32 %v506_v10, %v514_v21  ;;  %v558_v18 = vmul.f32 %v741_v14, %v926_v44 }
 0x1b1   : > { %590 = vst.msk [vmem:[%s950_s29 + $0x28] sm:$0xff] %vm433_vm1, %v582_v12  ;;  %746 = vrsqrt.f32 %v529_v13 }
 0x1b2   : > { %585 = vst.msk [vmem:[%s950_s29] sm:$0xff] %vm433_vm1, %v577_v15  ;;  %v530_v19 = vadd.f32 1e-05, %v522_v16  ;;  %v566_v20 = vmul.f32 %v558_v18, %v543_v17 }
 0x1b4   : > { %748 = vrsqrt.f32 %v530_v19  ;;  %v581_v23 = vadd.f32 %v682_v28, %v566_v20 }
 0x1b6   : > { %589 = vst.msk [vmem:[%s950_s29 + $0x20] sm:$0xff] %vm433_vm1, %v581_v23 }
 0x1b7   : > { %v743_v24 = vpop.eup %742 }
 0x1b8   : > { %v556_v26 = vmul.f32 %v743_v24, %v926_v44 }
 0x1b9   : > { %v745_v22 = vpop.eup %744 }
 0x1ba   : > { %v564_v30 = vmul.f32 %v556_v26, %v541_v25  ;;  %v557_v31 = vmul.f32 %v745_v22, %v926_v44 }
 0x1bb   : > { %v747_v32 = vpop.eup %746 }
 0x1bc   : > { %v579_v34 = vadd.f32 %v682_v28, %v564_v30  ;;  %v565_v35 = vmul.f32 %v557_v31, %v542_v29  ;;  %v560_v43 = vmul.f32 %v747_v32, %v926_v44 }
 0x1be   : > { %v749_v36 = vpop.eup %748  ;;  %587 = vst.msk [vmem:[%s950_s29 + $0x10] sm:$0xff] %vm433_vm1, %v579_v34  ;;  %v580_v37 = vadd.f32 %v682_v28, %v565_v35  ;;  %v568_v38 = vmul.f32 %v560_v43, %v545_v33 }
 0x1bf   : > { %v561_v39 = vmul.f32 %v749_v36, %v926_v44 }
 0x1c0   : > { %588 = vst.msk [vmem:[%s950_s29 + $0x18] sm:$0xff] %vm433_vm1, %v580_v37  ;;  %v583_v40 = vadd.f32 %v682_v28, %v568_v38 }
 0x1c1   : > { %v569_v42 = vmul.f32 %v561_v39, %v546_v52 }
 0x1c2   : > { %591 = vst.msk [vmem:[%s950_s29 + $0x30] sm:$0xff] %vm433_vm1, %v583_v40 }
 0x1c3   : > { %v584_v53 = vadd.f32 %v682_v28, %v569_v42 }
 0x1c5   : > { %592 = vst.msk [vmem:[%s950_s29 + $0x38] sm:$0xff] %vm433_vm1, %v584_v53 }
 0x1c6 PF: > { %s15_s18 = sadd.s32 1, %s756_s18  }
 0x1c7   : > { %p12_p4 = scmp.ge.s32.totalorder %s15_s18, 4  }
 0x1c9   :  { %14 = sbr.rel (!%p12_p4) target bundleno = 1 (0x1), region = 70 }

// kernel: tpu_custom_call.1
= control target key start
LH: loop header
LB: loop body
LE: loop exit
PB: predicated region body
PF: predicated region fallthrough
CT: control target
= control target key end

     0   :  { %s789_s18 = smov 0   ;;  %s985_s0 = inlined_call_operand.vmem [shape: bf16[128,144], index: 0, kind: input, shape index: {}]   ;;  %s986_s1 = inlined_call_operand.vmem [shape: bf16[144,32], index: 1, kind: input, shape index: {}]   ;;  %s987_s2 = inlined_call_operand.vmem [shape: f32[1,32], index: 2, kind: input, shape index: {}]   ;;  %s988_s3 = inlined_call_operand.vmem [shape: f32[1,32], index: 3, kind: input, shape index: {}]   ;;  %s989_s4 = inlined_call_operand.vmem [shape: f32[1,32], index: 4, kind: input, shape index: {}]   ;;  %s990_s5 = inlined_call_operand.vmem [shape: f32[128,32], index: 5, kind: output, shape index: {}]  }
   0x1 LB: > { %s649_s19 = sadd.s32 4294967295, %s756_s18   ;;  %p653_p0 = scmp.ge.s32.totalorder %s756_s18, 1  ;;  %s756_s18 = sphi %s789_s18, %s15_s18  }
   0x2   : > { %p189_p1 = scmp.lt.s32.totalorder %s756_s18, 3 }
   0x4   : > { %p190_p2 = pnand %p653_p0, %p189_p1 }
   0x5   : > { %v713_v0 = vld [vmem:[%s986_s1] sm:$0xff] (!%p190_p2)   ;;  %v758_v1 = vmov (!%p190_p2), 0   ;;  %s654_s22 = sshll.u32 (!%p190_p2), %s649_s19, 3  ;;  %v714_v2 = vld [vmem:[%s986_s1 + $0x8] sm:$0xff] (!%p190_p2)   ;;  %v715_v3 = vld [vmem:[%s986_s1 + $0x10] sm:$0xff] (!%p190_p2)   ;;  %vm355_vm0 = vcmask (!%p190_p2), 130048  }
   0x6   : > { %193 = sbr.rel (%p190_p2) target bundleno = 454 (0x1c6), region = 40  ;;  %368 = vmatprep.subr.bf16.mxu0 (!%p190_p2), %v758_v1  ;;  %686 = vmatprep.subr.bf16.mxu1 (!%p190_p2), %v758_v1  ;;  %p219_p3 = scmp.lt.s32.totalorder (!%p190_p2), %s654_s22, 15  ;;  %v716_v4 = vld [vmem:[%s986_s1 + $0x18] sm:$0xff] (!%p190_p2)   ;;  %v717_v7 = vld [vmem:[%s986_s1 + $0x20] sm:$0xff] (!%p190_p2)   ;;  %v718_v8 = vld [vmem:[%s986_s1 + $0x28] sm:$0xff] (!%p190_p2)   ;;  %vm433_vm1 = vcmask (!%p190_p2), 261120  }
   0x7   : > { %369 = vmatpush1.bf16.msra.mxu0 (!%p190_p2), %v713_v0  ;;  %695 = vmatpush1.bf16.msra.mxu1 (!%p190_p2), %v713_v0  ;;  %v719_v9 = vld [vmem:[%s986_s1 + $0x30] sm:$0xff] (!%p190_p2)   ;;  %v720_v10 = vld [vmem:[%s986_s1 + $0x38] sm:$0xff] (!%p190_p2)   ;;  %v721_v11 = vld [vmem:[%s986_s1 + $0x40] sm:$0xff] (!%p190_p2)  }
   0x8   : > { %370 = vmatprep.subr.bf16.mxu0 (!%p190_p2), %v758_v1  ;;  %687 = vmatprep.subr.bf16.mxu1 (!%p190_p2), %v758_v1  ;;  %v659_v18 = vld [vmem:[%s987_s2] ss:$0 sm:$0xff] (!%p190_p2) }
   0xb   : > { %371 = vmatpush1.bf16.msra.mxu0 (!%p190_p2), %v714_v2  ;;  %696 = vmatpush1.bf16.msra.mxu1 (!%p190_p2), %v714_v2 }
   0xc   : > { %372 = vmatprep.subr.bf16.mxu0 (!%p190_p2), %v758_v1  ;;  %688 = vmatprep.subr.bf16.mxu1 (!%p190_p2), %v758_v1 }
   0xd   : > { %s992_s22 = smov (!%p219_p3, %s654_s22), 15 }
   0xe   : > { %s685_s27 = sshll.u32 %s992_s22, 3 }
   0xf   : > { %s814_s30 = scalar_lea.vmem %s985_s0, %s685_s27  ;;  %373 = vmatpush1.bf16.msra.mxu0 %v715_v3  ;;  %697 = vmatpush1.bf16.msra.mxu1 %v715_v3  ;;  %s950_s29 = scalar_lea.vmem %s990_s5, %s685_s27 }
  0x10   : > { %v724_v5 = vld [vmem:[%s814_s30 + $0x4] ss:$8 sps:$4 sm:$0xff]   ;;  %374 = vmatprep.subr.bf16.mxu0 %v758_v1  ;;  %689 = vmatprep.subr.bf16.mxu1 %v758_v1  ;;  %v722_v12 = vld [vmem:[%s814_s30] ss:$8 sps:$4 sm:$0xff]   ;;  %v728_v14 = vld [vmem:[%s814_s30 + $0x14] ss:$8 sps:$4 sm:$0xff]  }
  0x11   : > { %v727_v6 = vld [vmem:[%s814_s30 + $0x24] ss:$8 sps:$4 sm:$0xff]   ;;  %677 = vmatprep.mubr.msk.bf16.mxu0 %vm355_vm0, %v724_v5  ;;  %v725_v13 = vld [vmem:[%s814_s30 + $0x20] ss:$8 sps:$4 sm:$0xff]   ;;  %v731_v15 = vld [vmem:[%s814_s30 + $0x34] ss:$8 sps:$4 sm:$0xff]  }
  0x12   : > { %679 = vmatprep.mubr.msk.bf16.mxu1 %vm355_vm0, %v727_v6  ;;  %v730_v16 = vld [vmem:[%s814_s30 + $0x10] ss:$8 sps:$4 sm:$0xff]  }
  0x13   : > { %375 = vmatpush1.bf16.msra.mxu0 %v716_v4  ;;  %698 = vmatpush1.bf16.msra.mxu1 %v716_v4  ;;  %v733_v17 = vld [vmem:[%s814_s30 + $0x30] ss:$8 sps:$4 sm:$0xff]  }
  0x14   : > { %376 = vmatprep.subr.bf16.mxu0 %v758_v1  ;;  %690 = vmatprep.subr.bf16.mxu1 %v758_v1 }
  0x17   : > { %377 = vmatpush1.bf16.msra.mxu0 %v717_v7  ;;  %699 = vmatpush1.bf16.msra.mxu1 %v717_v7 }
  0x18   : > { %378 = vmatprep.subr.bf16.mxu0 %v758_v1  ;;  %691 = vmatprep.subr.bf16.mxu1 %v758_v1 }
  0x1b   : > { %379 = vmatpush1.bf16.msra.mxu0 %v718_v8  ;;  %700 = vmatpush1.bf16.msra.mxu1 %v718_v8 }
  0x1c   : > { %380 = vmatprep.subr.bf16.mxu0 %v758_v1  ;;  %692 = vmatprep.subr.bf16.mxu1 %v758_v1 }
  0x1f   : > { %381 = vmatpush1.bf16.msra.mxu0 %v719_v9  ;;  %701 = vmatpush1.bf16.msra.mxu1 %v719_v9 }
  0x20   : > { %382 = vmatprep.subr.bf16.mxu0 %v758_v1  ;;  %693 = vmatprep.subr.bf16.mxu1 %v758_v1 }
  0x23   : > { %383 = vmatpush1.bf16.msra.mxu0 %v720_v10  ;;  %702 = vmatpush1.bf16.msra.mxu1 %v720_v10 }
  0x24   : > { %384 = vmatprep.subr.bf16.mxu0 %v758_v1  ;;  %694 = vmatprep.subr.bf16.mxu1 %v758_v1 }
  0x27   : > { %385 = vmatpush1.bf16.msra.mxu0 %v721_v11  ;;  %703 = vmatpush1.bf16.msra.mxu1 %v721_v11 }
  0x2a   : > { %401 = vmatmul.mubr.bf16.vlgmr.msra.gmra.mrb[0].mxu0 %v722_v12  ;;  %417 = vmatmul.mubr.bf16.vlgmr.msra.gmra.mrb[0].mxu1 %v725_v13 }
  0x2b   : > { %678 = vmatprep.mubr.msk.bf16.mxu0 %vm355_vm0, %v728_v14  ;;  %680 = vmatprep.mubr.msk.bf16.mxu1 %vm355_vm0, %v731_v15 }
  0x32   : > { %409 = vmatmul.mubr.bf16.gmra.mrb[4].mxu0 %v730_v16  ;;  %425 = vmatmul.mubr.bf16.gmra.mrb[4].mxu1 %v733_v17 }
  0xfd   : > { %v402_v19 = vpop.f32.mrb[0].mxu0  ;;  %v418_v20 = vpop.f32.mrb[0].mxu1 }
  0xfe   : > { %v849_v21 = vadd.f32 %v659_v18, %v402_v19  ;;  %v404_v22 = vpop.f32.mrb[1].mxu0  ;;  %v420_v23 = vpop.f32.mrb[1].mxu1  ;;  %v851_v26 = vadd.f32 %v659_v18, %v418_v20 }
  0xff   : > { %v405_v24 = vpop.f32.mrb[2].mxu0  ;;  %v421_v25 = vpop.f32.mrb[2].mxu1 }
 0x100   : > { %v853_v27 = vadd.f32 %v659_v18, %v405_v24  ;;  %v855_v28 = vadd.f32 %v659_v18, %v421_v25  ;;  %v407_v29 = vpop.f32.mrb[3].mxu0  ;;  %v423_v30 = vpop.f32.mrb[3].mxu1  ;;  %v434_v31 = vsel %vm433_vm1, %v849_v21, 0.0  ;;  %v446_v34 = vsel %vm433_vm1, %v851_v26, 0.0 }
 0x101   : > { %435 = vadd.xlane.f32.xlu0 %v434_v31  ;;  %v467_v46 = vmul.f32 %v849_v21, %v849_v21  ;;  %v471_v51 = vmul.f32 %v851_v26, %v851_v26 }
 0x102   : > { %v449_v32 = vsel %vm433_vm1, %v855_v28, 0.0  ;;  %v468_v33 = vmul.f32 %v853_v27, %v853_v27  ;;  %v472_v39 = vmul.f32 %v855_v28, %v855_v28  ;;  %v437_v44 = vsel %vm433_vm1, %v853_v27, 0.0 }
 0x103   : > { %450 = vadd.xlane.f32.xlu1 %v449_v32  ;;  %v475_v49 = vsel %vm433_vm1, %v467_v46, 0.0  ;;  %v487_v54 = vsel %vm433_vm1, %v471_v51, 0.0 }
 0x104   : > { %v478_v37 = vsel %vm433_vm1, %v468_v33, 0.0  ;;  %v490_v48 = vsel %vm433_vm1, %v472_v39, 0.0 }
 0x105   : > { %447 = vadd.xlane.f32.xlu0 %v446_v34  ;;  %v410_v35 = vpop.f32.mrb[4].mxu0  ;;  %v426_v36 = vpop.f32.mrb[4].mxu1 }
 0x106   : > { %v412_v38 = vpop.f32.mrb[5].mxu0  ;;  %v428_v40 = vpop.f32.mrb[5].mxu1  ;;  %v868_v43 = vadd.f32 %v659_v18, %v410_v35  ;;  %v882_v53 = vadd.f32 %v659_v18, %v426_v36 }
 0x107   : > { %479 = vadd.xlane.f32.xlu1 %v478_v37  ;;  %v413_v41 = vpop.f32.mrb[6].mxu0  ;;  %v429_v42 = vpop.f32.mrb[6].mxu1 }
 0x108   : > { %v415_v45 = vpop.f32.mrb[7].mxu0  ;;  %v431_v47 = vpop.f32.mrb[7].mxu1  ;;  %v440_v50 = vsel %vm433_vm1, %v868_v43, 0.0  ;;  %v880_v52 = vadd.f32 %v659_v18, %v413_v41  ;;  %v885_v55 = vadd.f32 %v659_v18, %v429_v42  ;;  %v452_v57 = vsel %vm433_vm1, %v882_v53, 0.0 }
 0x109   : > { %438 = vadd.xlane.f32.xlu0 %v437_v44  ;;  %v469_v58 = vmul.f32 %v868_v43, %v868_v43  ;;  %v473_v62 = vmul.f32 %v882_v53, %v882_v53  ;;  %v926_v44 = vld [vmem:[%s988_s3] ss:$0 sm:$0xff] }
 0x10a   : > { %v443_v56 = vsel %vm433_vm1, %v880_v52, 0.0  ;;  %v455_v59 = vsel %vm433_vm1, %v885_v55, 0.0  ;;  %v470_v60 = vmul.f32 %v880_v52, %v880_v52  ;;  %v474_v0 = vmul.f32 %v885_v55, %v885_v55 }
 0x10b   : > { %491 = vadd.xlane.f32.xlu1 %v490_v48  ;;  %v481_v61 = vsel %vm433_vm1, %v469_v58, 0.0  ;;  %v493_v1 = vsel %vm433_vm1, %v473_v62, 0.0 }
 0x10c   : > { %v484_v63 = vsel %vm433_vm1, %v470_v60, 0.0  ;;  %v496_v2 = vsel %vm433_vm1, %v474_v0, 0.0 }
 0x10d   : > { %476 = vadd.xlane.f32.xlu0 %v475_v49 }
 0x10f   : > { %441 = vadd.xlane.f32.xlu1 %v440_v50 }
 0x111   : > { %488 = vadd.xlane.f32.xlu0 %v487_v54 }
 0x113   : > { %444 = vadd.xlane.f32.xlu1 %v443_v56 }
 0x115   : > { %453 = vadd.xlane.f32.xlu0 %v452_v57 }
 0x117   : > { %456 = vadd.xlane.f32.xlu1 %v455_v59 }
 0x119   : > { %482 = vadd.xlane.f32.xlu0 %v481_v61 }
 0x11b   : > { %485 = vadd.xlane.f32.xlu1 %v484_v63 }
 0x11d   : > { %494 = vadd.xlane.f32.xlu0 %v493_v1 }
 0x11f   : > { %497 = vadd.xlane.f32.xlu1 %v496_v2 }
 0x18e   : > { %v436_v3 = vpop.xlane.xlu0 %435 }
 0x18f   : > { %v907_v10 = vmul.f32 0.03125, %v436_v3 }
 0x190   : > { %v451_v4 = vpop.xlane.xlu1 %450 }
 0x191   : > { %v905_v7 = vmul.f32 0.03125, %v451_v4  ;;  %v507_v17 = vmul.f32 %v907_v10, %v907_v10 }
 0x192   : > { %v448_v5 = vpop.xlane.xlu0 %447 }
 0x193   : > { %v512_v12 = vmul.f32 %v905_v7, %v905_v7  ;;  %v913_v22 = vmul.f32 0.03125, %v448_v5  ;;  %v544_v49 = vsub.f32 %v855_v28, %v905_v7  ;;  %v682_v28 = vld [vmem:[%s989_s4] ss:$0 sm:$0xff] }
 0x194   : > { %v480_v6 = vpop.xlane.xlu1 %479 }
 0x195   : > { %v500_v13 = vmul.f32 0.03125, %v480_v6  ;;  %v511_v32 = vmul.f32 %v913_v22, %v913_v22 }
 0x196   : > { %v439_v8 = vpop.xlane.xlu0 %438 }
 0x197   : > { %v460_v9 = vmul.f32 0.03125, %v439_v8 }
 0x198   : > { %v492_v11 = vpop.xlane.xlu1 %491 }
 0x199   : > { %v508_v14 = vmul.f32 %v460_v9, %v460_v9  ;;  %v504_v15 = vmul.f32 0.03125, %v492_v11  ;;  %v540_v57 = vsub.f32 %v853_v27, %v460_v9  ;;  %v539_v27 = vsub.f32 %v849_v21, %v907_v10 }
 0x19a   : > { %v477_v16 = vpop.xlane.xlu0 %476 }
 0x19b   : > { %v516_v18 = vsub.f32 %v500_v13, %v508_v14  ;;  %v520_v19 = vsub.f32 %v504_v15, %v512_v12  ;;  %v499_v20 = vmul.f32 0.03125, %v477_v16 }
 0x19c   : > { %v442_v23 = vpop.xlane.xlu1 %441 }
 0x19d   : > { %v524_v24 = vadd.f32 1e-05, %v516_v18  ;;  %v528_v25 = vadd.f32 1e-05, %v520_v19  ;;  %v515_v29 = vsub.f32 %v499_v20, %v507_v17  ;;  %v917_v37 = vmul.f32 0.03125, %v442_v23 }
 0x19e   : > { %v489_v30 = vpop.xlane.xlu0 %488  ;;  %v543_v17 = vsub.f32 %v851_v26, %v913_v22 }
 0x19f   : > { %734 = vrsqrt.f32 %v524_v24  ;;  %v523_v31 = vadd.f32 1e-05, %v515_v29  ;;  %v503_v33 = vmul.f32 0.03125, %v489_v30  ;;  %v509_v45 = vmul.f32 %v917_v37, %v917_v37 }
 0x1a0   : > { %736 = vrsqrt.f32 %v528_v25  ;;  %v445_v34 = vpop.xlane.xlu1 %444  ;;  %v541_v25 = vsub.f32 %v868_v43, %v917_v37 }
 0x1a1   : > { %738 = vrsqrt.f32 %v523_v31  ;;  %v519_v35 = vsub.f32 %v503_v33, %v511_v32  ;;  %v919_v40 = vmul.f32 0.03125, %v445_v34 }
 0x1a2   : > { %v454_v36 = vpop.xlane.xlu0 %453 }
 0x1a3   : > { %v527_v38 = vadd.f32 1e-05, %v519_v35  ;;  %v921_v41 = vmul.f32 0.03125, %v454_v36  ;;  %v510_v50 = vmul.f32 %v919_v40, %v919_v40  ;;  %v542_v29 = vsub.f32 %v880_v52, %v919_v40 }
 0x1a4   : > { %v457_v39 = vpop.xlane.xlu1 %456 }
 0x1a5   : > { %740 = vrsqrt.f32 %v527_v38  ;;  %v513_v59 = vmul.f32 %v921_v41, %v921_v41  ;;  %v466_v60 = vmul.f32 0.03125, %v457_v39  ;;  %v545_v33 = vsub.f32 %v882_v53, %v921_v41 }
 0x1a6   : > { %v483_v42 = vpop.xlane.xlu0 %482 }
 0x1a7   : > { %v501_v46 = vmul.f32 0.03125, %v483_v42  ;;  %v514_v21 = vmul.f32 %v466_v60, %v466_v60  ;;  %v546_v52 = vsub.f32 %v885_v55, %v466_v60 }
 0x1a8   : > { %v486_v47 = vpop.xlane.xlu1 %485 }
 0x1a9   : > { %v735_v48 = vpop.eup %734  ;;  %v517_v51 = vsub.f32 %v501_v46, %v509_v45  ;;  %v502_v54 = vmul.f32 0.03125, %v486_v47 }
 0x1aa   : > { %v737_v56 = vpop.eup %736  ;;  %v555_v58 = vmul.f32 %v735_v48, %v926_v44  ;;  %v495_v61 = vpop.xlane.xlu0 %494 }
 0x1ab   : > { %v739_v62 = vpop.eup %738  ;;  %v559_v63 = vmul.f32 %v737_v56, %v926_v44  ;;  %v525_v0 = vadd.f32 1e-05, %v517_v51  ;;  %v518_v1 = vsub.f32 %v502_v54, %v510_v50  ;;  %v505_v2 = vmul.f32 0.03125, %v495_v61 }
 0x1ac   : > { %v563_v3 = vmul.f32 %v555_v58, %v540_v57  ;;  %v554_v4 = vmul.f32 %v739_v62, %v926_v44  ;;  %v498_v5 = vpop.xlane.xlu1 %497 }
 0x1ad   : > { %v567_v6 = vmul.f32 %v559_v63, %v544_v49  ;;  %742 = vrsqrt.f32 %v525_v0  ;;  %v526_v7 = vadd.f32 1e-05, %v518_v1  ;;  %v521_v8 = vsub.f32 %v505_v2, %v513_v59 }
 0x1ae   : > { %v578_v9 = vadd.f32 %v682_v28, %v563_v3  ;;  %v562_v11 = vmul.f32 %v554_v4, %v539_v27  ;;  %v506_v10 = vmul.f32 0.03125, %v498_v5 }
 0x1af   : > { %v582_v12 = vadd.f32 %v682_v28, %v567_v6  ;;  %744 = vrsqrt.f32 %v526_v7  ;;  %v529_v13 = vadd.f32 1e-05, %v521_v8  ;;  %v741_v14 = vpop.eup %740 }
 0x1b0   : > { %586 = vst.msk [vmem:[%s950_s29 + $0x8] sm:$0xff] %vm433_vm1, %v578_v9  ;;  %v577_v15 = vadd.f32 %v682_v28, %v562_v11  ;;  %v522_v16 = vsub.f32 %v506_v10, %v514_v21  ;;  %v558_v18 = vmul.f32 %v741_v14, %v926_v44 }
 0x1b1   : > { %590 = vst.msk [vmem:[%s950_s29 + $0x28] sm:$0xff] %vm433_vm1, %v582_v12  ;;  %746 = vrsqrt.f32 %v529_v13 }
 0x1b2   : > { %585 = vst.msk [vmem:[%s950_s29] sm:$0xff] %vm433_vm1, %v577_v15  ;;  %v530_v19 = vadd.f32 1e-05, %v522_v16  ;;  %v566_v20 = vmul.f32 %v558_v18, %v543_v17 }
 0x1b4   : > { %748 = vrsqrt.f32 %v530_v19  ;;  %v581_v23 = vadd.f32 %v682_v28, %v566_v20 }
 0x1b6   : > { %589 = vst.msk [vmem:[%s950_s29 + $0x20] sm:$0xff] %vm433_vm1, %v581_v23 }
 0x1b7   : > { %v743_v24 = vpop.eup %742 }
 0x1b8   : > { %v556_v26 = vmul.f32 %v743_v24, %v926_v44 }
 0x1b9   : > { %v745_v22 = vpop.eup %744 }
 0x1ba   : > { %v564_v30 = vmul.f32 %v556_v26, %v541_v25  ;;  %v557_v31 = vmul.f32 %v745_v22, %v926_v44 }
 0x1bb   : > { %v747_v32 = vpop.eup %746 }
 0x1bc   : > { %v579_v34 = vadd.f32 %v682_v28, %v564_v30  ;;  %v565_v35 = vmul.f32 %v557_v31, %v542_v29  ;;  %v560_v43 = vmul.f32 %v747_v32, %v926_v44 }
 0x1be   : > { %v749_v36 = vpop.eup %748  ;;  %587 = vst.msk [vmem:[%s950_s29 + $0x10] sm:$0xff] %vm433_vm1, %v579_v34  ;;  %v580_v37 = vadd.f32 %v682_v28, %v565_v35  ;;  %v568_v38 = vmul.f32 %v560_v43, %v545_v33 }
 0x1bf   : > { %v561_v39 = vmul.f32 %v749_v36, %v926_v44 }
 0x1c0   : > { %588 = vst.msk [vmem:[%s950_s29 + $0x18] sm:$0xff] %vm433_vm1, %v580_v37  ;;  %v583_v40 = vadd.f32 %v682_v28, %v568_v38 }
 0x1c1   : > { %v569_v42 = vmul.f32 %v561_v39, %v546_v52 }
 0x1c2   : > { %591 = vst.msk [vmem:[%s950_s29 + $0x30] sm:$0xff] %vm433_vm1, %v583_v40 }
 0x1c3   : > { %v584_v53 = vadd.f32 %v682_v28, %v569_v42 }
 0x1c5   : > { %592 = vst.msk [vmem:[%s950_s29 + $0x38] sm:$0xff] %vm433_vm1, %v584_v53 }
 0x1c6 PF: > { %s15_s18 = sadd.s32 1, %s756_s18  }
 0x1c7   : > { %p12_p4 = scmp.ge.s32.totalorder %s15_s18, 4  }
 0x1c9   :  { %14 = sbr.rel (!%p12_p4) target bundleno = 1 (0x1), region = 70 }

</bundles_post_ra>
